<compile_context>
chip_gen: v5e
topology: v5e:2x2
jax: 0.10.0
libtpu: 0.0.40
codegen_flags: <defaults>
</compile_context>

<pallas_src>
import jax
import jax.numpy as jnp
from jax.experimental import pallas as pl
from jax.experimental.pallas import tpu as pltpu


def _round_up(x, m):
    return ((x + m - 1) // m) * m


def _fused_head_kernel(x_ref, w_ref, b_ref, o_ref):
    """One ROI tile: (TILE_N, K)bf16 @ (K, NCLS_PAD)bf16 + bias -> f32 logits."""
    acc = jnp.dot(x_ref[...], w_ref[...], preferred_element_type=jnp.float32)
    o_ref[...] = (acc + b_ref[...]).astype(o_ref.dtype)


def attr_classifier_head(pooled_feature, conv_w, conv_b, fc_w, fc_b, *, tile_n=64):
    """pooled_feature: [N_roi, C, H, W] (NCHW, as produced by ROIAlign, H=W=7).

    conv_w: [C, C, 3, 3] (PyTorch OIHW), conv_b: [C]
    fc_w:   [ncls, C]    (PyTorch Linear weight), fc_b: [ncls]
    returns: [N_roi, ncls] float32 logits
    """
    N, C, H, W = pooled_feature.shape
    KH = KW = 3
    ncls = fc_b.shape[0]
    K = C * H * W

    # ---- weight-only prep (done once, plain XLA) ---------------------------
    # conv expressed as matmul: rows ordered (kh, kw, c_in)
    w_conv_mat = jnp.transpose(conv_w, (2, 3, 1, 0)).reshape(KH * KW * C, C)
    w_fc_t = jnp.transpose(fc_w)                                   # (C, ncls)
    w_fused = w_conv_mat @ w_fc_t                                  # (9*C, ncls)
    b_fused = conv_b @ w_fc_t + fc_b                               # (ncls,)

    # Fold the average pool (and the conv's zero padding) in: the mean over
    # conv-output positions of the im2col patch at kernel offset (kh, kw) is a
    # fixed 0/1 coverage mask over the H*W input positions.
    mask = [[1.0 if (kh - 1 <= a <= kh + H - 2) and (kw - 1 <= b <= kw + W - 2)
             else 0.0
             for kh in range(KH) for kw in range(KW)]
            for a in range(H) for b in range(W)]
    m = jnp.array(mask, jnp.float32)                               # (H*W, 9)
    # Rows of W_big ordered (c, h, w) so the NCHW feature flattens for free.
    w_big = jnp.einsum('sk,kcj->csj', m,
                       w_fused.reshape(KH * KW, C, ncls)) / float(H * W)
    w_big = w_big.reshape(K, ncls)                                 # (C*H*W, ncls)

    # ---- padding / tiling ---------------------------------------------------
    ncls_pad = _round_up(max(ncls, 128), 128)      # lane-dense, unmasked stores
    tile = min(tile_n, _round_up(N, 16))           # multiple of 16 (bf16 sublanes)
    n_pad = _round_up(N, tile)                     # realistic N -> >=2 grid steps

    x_flat = pooled_feature.reshape(N, K).astype(jnp.bfloat16)     # free reshape
    x_flat = jnp.pad(x_flat, ((0, n_pad - N), (0, 0)))
    w_big_p = jnp.pad(w_big, ((0, 0), (0, ncls_pad - ncls))).astype(jnp.bfloat16)
    b_p = jnp.pad(b_fused, (0, ncls_pad - ncls)).reshape(1, ncls_pad)

    out = pl.pallas_call(
        _fused_head_kernel,
        grid=(n_pad // tile,),
        in_specs=[
            pl.BlockSpec((tile, K), lambda i: (i, 0)),
            pl.BlockSpec((K, ncls_pad), lambda i: (0, 0)),   # resident across steps
            pl.BlockSpec((1, ncls_pad), lambda i: (0, 0)),
        ],
        out_specs=pl.BlockSpec((tile, ncls_pad), lambda i: (i, 0)),
        out_shape=jax.ShapeDtypeStruct((n_pad, ncls_pad), jnp.float32),
        compiler_params=pltpu.CompilerParams(
            dimension_semantics=("parallel",)),
    )(x_flat, w_big_p, b_p)
    return out[:N, :ncls]


def _reference_head(x, conv_w, conv_b, fc_w, fc_b):
    """Pure-JAX f32 reference matching PyTorch conv -> avgpool -> flatten -> fc."""
    y = jax.lax.conv_general_dilated(
        x, conv_w, window_strides=(1, 1), padding=((1, 1), (1, 1)),
        dimension_numbers=("NCHW", "OIHW", "NCHW"))
    y = y + conv_b.reshape(1, -1, 1, 1)
    y = jnp.mean(y, axis=(2, 3))                    # AdaptiveAvgPool2d((1,1))
    return y @ fc_w.T + fc_b


if __name__ == "__main__":
    key = jax.random.PRNGKey(0)
    C = 32        # transformer.d_model (hidden_dim)
    NCLS = 10     # args.num_att_classes
    N_ROI = 6     # total number of boxes across targets (ROIAlign output count)
    ROI = 7       # ROIAlign output_size

    k1, k2, k3, k4, k5 = jax.random.split(key, 5)
    pooled_feature = jax.random.normal(k1, (N_ROI, C, ROI, ROI), jnp.float32)
    conv_w = jax.random.normal(k2, (C, C, 3, 3), jnp.float32) * 0.05
    conv_b = jax.random.normal(k3, (C,), jnp.float32) * 0.05
    fc_w = jax.random.normal(k4, (NCLS, C), jnp.float32) * 0.05
    fc_b = jax.random.normal(k5, (NCLS,), jnp.float32) * 0.05

    attributes = attr_classifier_head(pooled_feature, conv_w, conv_b, fc_w, fc_b)
    attributes = jax.block_until_ready(attributes)

    ref = _reference_head(pooled_feature, conv_w, conv_b, fc_w, fc_b)
    assert attributes.shape == (N_ROI, NCLS), attributes.shape
    err = float(jnp.max(jnp.abs(attributes - ref)))
    # bf16 activations/weights (f32 accumulation) -> loosened tolerance vs f32 ref.
    assert jnp.allclose(attributes, ref, atol=2e-2, rtol=2e-2), err
    print("KERNEL_OK")
</pallas_src>

<mosaic_0001>
module attributes {stable_mosaic.version = 11 : i64} {
  func.func @_fused_head_kernel(%arg0: i32, %arg1: memref<16x1568xbf16, #tpu.memory_space<vmem>>, %arg2: memref<1568x128xbf16, #tpu.memory_space<vmem>>, %arg3: memref<1x128xf32, #tpu.memory_space<vmem>>, %arg4: memref<16x128xf32, #tpu.memory_space<vmem>>) attributes {dimension_semantics = [#tpu.dimension_semantics<parallel>], iteration_bounds = array<i64: 1>, scalar_prefetch = 0 : i64, scratch_operands = 0 : i64, tpu.core_type = #tpu.core_type<tc>, window_params = [{transform_indices = @transform_0, window_bounds = array<i64: 16, 1568>}, {pipeline_mode = #tpu.pipeline_mode<synchronous>, transform_indices = @transform_1, window_bounds = array<i64: 1568, 128>}, {pipeline_mode = #tpu.pipeline_mode<synchronous>, transform_indices = @transform_2, window_bounds = array<i64: 1, 128>}, {transform_indices = @transform_3, window_bounds = array<i64: 16, 128>}]} {
    %c0 = arith.constant 0 : index
    %c0_0 = arith.constant 0 : index
    %0 = vector.load %arg1[%c0, %c0_0] : memref<16x1568xbf16, #tpu.memory_space<vmem>>, vector<16x1568xbf16>
    %c0_1 = arith.constant 0 : index
    %c0_2 = arith.constant 0 : index
    %1 = vector.load %arg2[%c0_1, %c0_2] : memref<1568x128xbf16, #tpu.memory_space<vmem>>, vector<1568x128xbf16>
    %cst = arith.constant dense<0.000000e+00> : vector<16x128xf32>
    %2 = tpu.matmul %0, %1, %cst {dimension_numbers = #tpu.dot_dimension_numbers<[1], [0], [0], [1], [0, 0, 1, 1], [], []>} : vector<16x1568xbf16>, vector<1568x128xbf16>, vector<16x128xf32> -> vector<16x128xf32>
    %c0_3 = arith.constant 0 : index
    %c0_4 = arith.constant 0 : index
    %3 = vector.load %arg3[%c0_3, %c0_4] : memref<1x128xf32, #tpu.memory_space<vmem>>, vector<1x128xf32>
    %4 = vector.broadcast %3 : vector<1x128xf32> to vector<16x128xf32>
    %5 = arith.addf %2, %4 : vector<16x128xf32>
    %c0_5 = arith.constant 0 : index
    %c0_6 = arith.constant 0 : index
    %6 = vector.load %arg4[%c0_5, %c0_6] : memref<16x128xf32, #tpu.memory_space<vmem>>, vector<16x128xf32>
    tpu.vector_store %arg4[%c0_5, %c0_6], %5 {strides = array<i32>} : memref<16x128xf32, #tpu.memory_space<vmem>>, vector<16x128xf32>,
    return
  }
  func.func @transform_0(%arg0: i32) -> (i32, i32) {
    %c0_i32 = arith.constant 0 : i32
    %c0_i32_0 = arith.constant 0 : i32
    return %arg0, %c0_i32 : i32, i32
  }
  func.func @transform_1(%arg0: i32) -> (i32, i32) {
    %c0_i32 = arith.constant 0 : i32
    %c0_i32_0 = arith.constant 0 : i32
    %c0_i32_1 = arith.constant 0 : i32
    return %c0_i32, %c0_i32_0 : i32, i32
  }
  func.func @transform_2(%arg0: i32) -> (i32, i32) {
    %c0_i32 = arith.constant 0 : i32
    %c0_i32_0 = arith.constant 0 : i32
    %c0_i32_1 = arith.constant 0 : i32
    return %c0_i32, %c0_i32_0 : i32, i32
  }
  func.func @transform_3(%arg0: i32) -> (i32, i32) {
    %c0_i32 = arith.constant 0 : i32
    %c0_i32_0 = arith.constant 0 : i32
    return %arg0, %c0_i32 : i32, i32
  }
}

</mosaic_0001>

<bundles_post_ra>
// kernel: tpu_custom_call.1
= control target key start
LH: loop header
LB: loop body
LE: loop exit
PB: predicated region body
PF: predicated region fallthrough
CT: control target
= control target key end

     0   :  { %8 = vsyncpa [#allocation3], 0  ;;  %s1808_s0 = inlined_call_operand.hbm [shape: bf16[16,1568], index: 0, kind: input, shape index: {}]   ;;  %s1809_s1 = inlined_call_operand.hbm [shape: bf16[1568,128], index: 1, kind: input, shape index: {}]   ;;  %s1810_s2 = inlined_call_operand.vmem [shape: f32[1,128], index: 2, kind: input, shape index: {}]   ;;  %s1811_s3 = inlined_call_operand.hbm [shape: f32[16,128], index: 3, kind: output, shape index: {}]  }
   0x1   :  { %9 = vsyncpa [#allocation6], 0 }
   0x2   :  { %10 = vsyncpa [#allocation4], 0  ;;  %s15_s14 = sshll.u32 %s1808_s0, 4  ;;  %s1767_s15 = smov [#allocation2]   ;;  %s16_s14 = int_to_ptr.hbm [resolvable:$true] %s15_s14 }
   0x3   :  { %s17_s16 = sshll.u32 %s1767_s15, 4  ;;  %s28_s19 = sshll.u32 %s1809_s1, 4  ;;  %s18_s16 = int_to_ptr.vmem [resolvable:$true] %s17_s16  ;;  %s29_s19 = int_to_ptr.hbm [resolvable:$true] %s28_s19 }
   0x4   :  { %s1768_s20 = smov 832   ;;  %s1769_s21 = smov 52  }
   0x5   :  { %23 = dma.hbm_to_vmem [thread:$0]  %s16_s14, 1664, %s18_s16, [#allocation3], %s1768_s20, %s1768_s20, %s1769_s21  }
   0x6   :  { %s1770_s22 = smov [#allocation5]   ;;  %s1771_s24 = smov 64  }
   0x7   :  { %s30_s23 = sshll.u32 %s1770_s22, 4  ;;  %s1772_s25 = smov 4   ;;  %s31_s23 = int_to_ptr.vmem [resolvable:$true] %s30_s23 }
   0x8   :  { %36 = dma.hbm_to_vmem [thread:$0]  %s29_s19, 12544, %s31_s23, [#allocation6], %s1771_s24, %s1771_s24, %s1772_s25  }
   0x9   :  { %1761 = dma.done.wait [#allocation3], 1664  }
   0xa   :  { %1762 = vsyncadd [#allocation3], 4294965632 }
   0xb   :  { %1763 = dma.done.wait [#allocation6], 12544  }
   0xc   :  { %1764 = vsyncadd [#allocation6], 4294954752  ;;  %v1588_v0 = vld [vmem:[#allocation5 + $0x38] sm:$0xff]  ;;  %v1587_v4 = vld [vmem:[#allocation5 + $0x30] sm:$0xff]  ;;  %vm915_vm0 = vcmask 261120   ;;  %s1109_s29 = sshll.u32 %s1811_s3, 4  ;;  %s1110_s29 = int_to_ptr.hbm [resolvable:$true] %s1109_s29 }
   0xd   :  { %v1604_v1 = vld [vmem:[#allocation5 + $0xb8] sm:$0xff]  ;;  %919 = vmatpush.bf16.msra.mxu0 %v1588_v0  ;;  %v1603_v5 = vld [vmem:[#allocation5 + $0xb0] sm:$0xff]  ;;  %v1586_v8 = vld [vmem:[#allocation5 + $0x28] sm:$0xff]  ;;  %s1774_s30 = smov 128   ;;  %s1775_s4 = smov 8  }
   0xe   :  { %v1612_v2 = vld [vmem:[#allocation5 + $0xf8] sm:$0xff]  ;;  %947 = vmatpush.bf16.msra.mxu2 %v1604_v1  ;;  %v1611_v6 = vld [vmem:[#allocation5 + $0xf0] sm:$0xff]  ;;  %v1602_v9 = vld [vmem:[#allocation5 + $0xa8] sm:$0xff] }
   0xf   :  { %v1596_v3 = vld [vmem:[#allocation5 + $0x78] sm:$0xff]  ;;  %961 = vmatpush.bf16.msra.mxu3 %v1612_v2  ;;  %v1595_v7 = vld [vmem:[#allocation5 + $0x70] sm:$0xff]  ;;  %v1610_v10 = vld [vmem:[#allocation5 + $0xe8] sm:$0xff] }
  0x10   :  { %933 = vmatpush.bf16.msra.mxu1 %v1596_v3  ;;  %v1594_v11 = vld [vmem:[#allocation5 + $0x68] sm:$0xff]  ;;  %v1585_v12 = vld [vmem:[#allocation5 + $0x20] sm:$0xff]  ;;  %v1584_v16 = vld [vmem:[#allocation5 + $0x18] sm:$0xff] }
  0x11   :  { %920 = vmatpush.bf16.msra.mxu0 %v1587_v4  ;;  %v1601_v13 = vld [vmem:[#allocation5 + $0xa0] sm:$0xff]  ;;  %v1600_v17 = vld [vmem:[#allocation5 + $0x98] sm:$0xff]  ;;  %v1583_v20 = vld [vmem:[#allocation5 + $0x10] sm:$0xff] }
  0x12   :  { %948 = vmatpush.bf16.msra.mxu2 %v1603_v5  ;;  %v1609_v14 = vld [vmem:[#allocation5 + $0xe0] sm:$0xff]  ;;  %v1608_v18 = vld [vmem:[#allocation5 + $0xd8] sm:$0xff]  ;;  %v1599_v21 = vld [vmem:[#allocation5 + $0x90] sm:$0xff] }
  0x13   :  { %962 = vmatpush.bf16.msra.mxu3 %v1611_v6  ;;  %v1593_v15 = vld [vmem:[#allocation5 + $0x60] sm:$0xff]  ;;  %v1592_v19 = vld [vmem:[#allocation5 + $0x58] sm:$0xff]  ;;  %v1607_v22 = vld [vmem:[#allocation5 + $0xd0] sm:$0xff] }
  0x14   :  { %934 = vmatpush.bf16.msra.mxu1 %v1595_v7  ;;  %v1591_v23 = vld [vmem:[#allocation5 + $0x50] sm:$0xff]  ;;  %v1582_v24 = vld [vmem:[#allocation5 + $0x8] sm:$0xff]  ;;  %v1581_v28 = vld [vmem:[#allocation5] sm:$0xff] }
  0x15   :  { %921 = vmatpush.bf16.msra.mxu0 %v1586_v8  ;;  %v1598_v25 = vld [vmem:[#allocation5 + $0x88] sm:$0xff]  ;;  %v1597_v29 = vld [vmem:[#allocation5 + $0x80] sm:$0xff]  ;;  %v1620_v31 = vld [vmem:[#allocation5 + $0x138] sm:$0xff] }
  0x16   :  { %949 = vmatpush.bf16.msra.mxu2 %v1602_v9  ;;  %v1606_v26 = vld [vmem:[#allocation5 + $0xc8] sm:$0xff]  ;;  %v1605_v30 = vld [vmem:[#allocation5 + $0xc0] sm:$0xff]  ;;  %v1125_v32 = vld [vmem:[#allocation2] sm:$0xf] }
  0x17   :  { %963 = vmatpush.bf16.msra.mxu3 %v1610_v10  ;;  %v1590_v27 = vld [vmem:[#allocation5 + $0x48] sm:$0xff]  ;;  %v1636_v34 = vld [vmem:[#allocation5 + $0x1b8] sm:$0xff]  ;;  %v1133_v35 = vld [vmem:[#allocation2 + $0x8] sm:$0xf] }
  0x18   :  { %935 = vmatpush.bf16.msra.mxu1 %v1594_v11  ;;  %v1574_v33 = vld [vmem:[#allocation2 + $0x30] sm:$0xf0]  ;;  %v1575_v36 = vld [vmem:[#allocation2 + $0x38] sm:$0xf0]  ;;  %v1644_v37 = vld [vmem:[#allocation5 + $0x1f8] sm:$0xff] }
  0x19   :  { %922 = vmatpush.bf16.msra.mxu0 %v1585_v12  ;;  %v1569_v38 = vld [vmem:[#allocation2 + $0xc] sm:$0xf]  ;;  %v1135_v39 = vld [vmem:[#allocation2 + $0x3c] sm:$0xf0]  ;;  %v1126_v41 = vor.u32 %v1574_v33, %v1125_v32  ;;  %v1134_v43 = vor.u32 %v1575_v36, %v1133_v35  ;;  %v1568_v44 = vld [vmem:[#allocation2 + $0x4] sm:$0xf] }
  0x1a   :  { %950 = vmatpush.bf16.msra.mxu2 %v1601_v13  ;;  %v1589_v40 = vld [vmem:[#allocation5 + $0x40] sm:$0xff]  ;;  %v1628_v42 = vld [vmem:[#allocation5 + $0x178] sm:$0xff]  ;;  %v1127_v45 = vld [vmem:[#allocation2 + $0x34] sm:$0xf0]  ;;  %v1138_v47 = vor.u32 %v1569_v38, %v1135_v39 }
  0x1b   :  { %964 = vmatpush.bf16.msra.mxu3 %v1609_v14  ;;  %v1619_v46 = vld [vmem:[#allocation5 + $0x130] sm:$0xff]  ;;  %v1130_v50 = vor.u32 %v1568_v44, %v1127_v45  ;;  %v1618_v52 = vld [vmem:[#allocation5 + $0x128] sm:$0xff]  ;;  %v1617_v56 = vld [vmem:[#allocation5 + $0x120] sm:$0xff] }
  0x1c   :  { %936 = vmatpush.bf16.msra.mxu1 %v1593_v15  ;;  %v1635_v48 = vld [vmem:[#allocation5 + $0x1b0] sm:$0xff]  ;;  %v1634_v53 = vld [vmem:[#allocation5 + $0x1a8] sm:$0xff]  ;;  %v1633_v57 = vld [vmem:[#allocation5 + $0x1a0] sm:$0xff] }
  0x1d   :  { %923 = vmatpush.bf16.msra.mxu0 %v1584_v16  ;;  %v1643_v49 = vld [vmem:[#allocation5 + $0x1f0] sm:$0xff]  ;;  %v1642_v54 = vld [vmem:[#allocation5 + $0x1e8] sm:$0xff]  ;;  %v1641_v58 = vld [vmem:[#allocation5 + $0x1e0] sm:$0xff] }
  0x1e   :  { %951 = vmatpush.bf16.msra.mxu2 %v1600_v17  ;;  %v1627_v51 = vld [vmem:[#allocation5 + $0x170] sm:$0xff]  ;;  %v1626_v55 = vld [vmem:[#allocation5 + $0x168] sm:$0xff]  ;;  %v1625_v59 = vld [vmem:[#allocation5 + $0x160] sm:$0xff] }
  0x1f   :  { %965 = vmatpush.bf16.msra.mxu3 %v1608_v18  ;;  %v1616_v60 = vld [vmem:[#allocation5 + $0x118] sm:$0xff]  ;;  %v1615_v0 = vld [vmem:[#allocation5 + $0x110] sm:$0xff]  ;;  %v1614_v4 = vld [vmem:[#allocation5 + $0x108] sm:$0xff] }
  0x20   :  { %937 = vmatpush.bf16.msra.mxu1 %v1592_v19  ;;  %v1632_v61 = vld [vmem:[#allocation5 + $0x198] sm:$0xff]  ;;  %v1631_v1 = vld [vmem:[#allocation5 + $0x190] sm:$0xff]  ;;  %v1630_v5 = vld [vmem:[#allocation5 + $0x188] sm:$0xff] }
  0x21   :  { %924 = vmatpush.bf16.msra.mxu0 %v1583_v20  ;;  %v1640_v62 = vld [vmem:[#allocation5 + $0x1d8] sm:$0xff]  ;;  %v1639_v2 = vld [vmem:[#allocation5 + $0x1d0] sm:$0xff]  ;;  %v1638_v6 = vld [vmem:[#allocation5 + $0x1c8] sm:$0xff] }
  0x22   :  { %952 = vmatpush.bf16.msra.mxu2 %v1599_v21  ;;  %v1624_v63 = vld [vmem:[#allocation5 + $0x158] sm:$0xff]  ;;  %v1623_v3 = vld [vmem:[#allocation5 + $0x150] sm:$0xff]  ;;  %v1622_v7 = vld [vmem:[#allocation5 + $0x148] sm:$0xff] }
  0x23   :  { %966 = vmatpush.bf16.msra.mxu3 %v1607_v22  ;;  %v1613_v8 = vld [vmem:[#allocation5 + $0x100] sm:$0xff]  ;;  %v1652_v11 = vld [vmem:[#allocation5 + $0x238] sm:$0xff]  ;;  %v1141_v13 = vld [vmem:[#allocation2 + $0x10] sm:$0xf] }
  0x24   :  { %938 = vmatpush.bf16.msra.mxu1 %v1591_v23  ;;  %v1629_v9 = vld [vmem:[#allocation5 + $0x180] sm:$0xff]  ;;  %v1668_v12 = vld [vmem:[#allocation5 + $0x2b8] sm:$0xff]  ;;  %v1149_v15 = vld [vmem:[#allocation2 + $0x18] sm:$0xf] }
  0x25   :  { %925 = vmatpush.bf16.msra.mxu0 %v1582_v24  ;;  %v1637_v10 = vld [vmem:[#allocation5 + $0x1c0] sm:$0xff]  ;;  %v1576_v14 = vld [vmem:[#allocation2 + $0x40] sm:$0xf0]  ;;  %v1571_v18 = vld [vmem:[#allocation2 + $0x1c] sm:$0xf] }
  0x26   :  { %953 = vmatpush.bf16.msra.mxu2 %v1598_v25  ;;  %v1577_v16 = vld [vmem:[#allocation2 + $0x48] sm:$0xf0]  ;;  %v1676_v17 = vld [vmem:[#allocation5 + $0x2f8] sm:$0xff]  ;;  %v1151_v19 = vld [vmem:[#allocation2 + $0x4c] sm:$0xf0]  ;;  %v1142_v23 = vor.u32 %v1576_v14, %v1141_v13 }
  0x27   :  { %967 = vmatpush.bf16.msra.mxu3 %v1606_v26  ;;  %v1621_v20 = vld [vmem:[#allocation5 + $0x140] sm:$0xff]  ;;  %v1570_v21 = vld [vmem:[#allocation2 + $0x14] sm:$0xf]  ;;  %v1150_v24 = vor.u32 %v1577_v16, %v1149_v15  ;;  %v1660_v25 = vld [vmem:[#allocation5 + $0x278] sm:$0xff]  ;;  %v1154_v26 = vor.u32 %v1571_v18, %v1151_v19 }
  0x28   :  { %939 = vmatpush.bf16.msra.mxu1 %v1590_v27  ;;  %v1143_v22 = vld [vmem:[#allocation2 + $0x44] sm:$0xf0]  ;;  %v1650_v32 = vld [vmem:[#allocation5 + $0x228] sm:$0xff]  ;;  %v1647_v44 = vld [vmem:[#allocation5 + $0x210] sm:$0xff] }
  0x29   :  { %926 = vmatpush.bf16.msra.mxu0 %v1581_v28  ;;  %v1146_v27 = vor.u32 %v1570_v21, %v1143_v22  ;;  %v1651_v28 = vld [vmem:[#allocation5 + $0x230] sm:$0xff]  ;;  %v1666_v33 = vld [vmem:[#allocation5 + $0x2a8] sm:$0xff]  ;;  %v1649_v36 = vld [vmem:[#allocation5 + $0x220] sm:$0xff] }
  0x2a   :  { %954 = vmatpush.bf16.msra.mxu2 %v1597_v29  ;;  %v1667_v29 = vld [vmem:[#allocation5 + $0x2b0] sm:$0xff]  ;;  %v1658_v35 = vld [vmem:[#allocation5 + $0x268] sm:$0xff]  ;;  %v1673_v38 = vld [vmem:[#allocation5 + $0x2e0] sm:$0xff] }
  0x2b   :  { %968 = vmatpush.bf16.msra.mxu3 %v1605_v30  ;;  %v1675_v30 = vld [vmem:[#allocation5 + $0x2f0] sm:$0xff]  ;;  %v1657_v39 = vld [vmem:[#allocation5 + $0x260] sm:$0xff] }
  0x2c   :  { %940 = vmatpush.bf16.msra.mxu1 %v1589_v40  ;;  %927 = vmatmul.bf16.vlgmr.msra.gmra.mxu0 %v1126_v41  ;;  %v1648_v40 = vld [vmem:[#allocation5 + $0x218] sm:$0xff]  ;;  %v1663_v45 = vld [vmem:[#allocation5 + $0x290] sm:$0xff] }
  0x2d   :  { %975 = vmatpush.bf16.msrb.mxu0 %v1620_v31  ;;  %955 = vmatmul.bf16.vlgmr.msra.gmra.mxu2 %v1134_v43  ;;  %v1659_v31 = vld [vmem:[#allocation5 + $0x270] sm:$0xff]  ;;  %v1664_v41 = vld [vmem:[#allocation5 + $0x298] sm:$0xff] }
  0x2e   :  { %1003 = vmatpush.bf16.msrb.mxu2 %v1636_v34  ;;  %969 = vmatmul.bf16.vlgmr.msra.gmra.mxu3 %v1138_v47  ;;  %v1674_v34 = vld [vmem:[#allocation5 + $0x2e8] sm:$0xff]  ;;  %v1656_v43 = vld [vmem:[#allocation5 + $0x258] sm:$0xff]  ;;  %v1655_v47 = vld [vmem:[#allocation5 + $0x250] sm:$0xff] }
  0x2f   :  { %1017 = vmatpush.bf16.msrb.mxu3 %v1644_v37  ;;  %941 = vmatmul.bf16.vlgmr.msra.gmra.mxu1 %v1130_v50  ;;  %v1665_v37 = vld [vmem:[#allocation5 + $0x2a0] sm:$0xff]  ;;  %v1670_v50 = vld [vmem:[#allocation5 + $0x2c8] sm:$0xff] }
  0x30   :  { %989 = vmatpush.bf16.msrb.mxu1 %v1628_v42  ;;  %v1672_v42 = vld [vmem:[#allocation5 + $0x2d8] sm:$0xff] }
  0x31   :  { %976 = vmatpush.bf16.msrb.mxu0 %v1619_v46  ;;  %v1671_v46 = vld [vmem:[#allocation5 + $0x2d0] sm:$0xff] }
  0x32   :  { %1004 = vmatpush.bf16.msrb.mxu2 %v1635_v48  ;;  %v1646_v48 = vld [vmem:[#allocation5 + $0x208] sm:$0xff] }
  0x33   :  { %1018 = vmatpush.bf16.msrb.mxu3 %v1643_v49  ;;  %v1662_v49 = vld [vmem:[#allocation5 + $0x288] sm:$0xff] }
  0x34   :  { %990 = vmatpush.bf16.msrb.mxu1 %v1627_v51  ;;  %v1654_v51 = vld [vmem:[#allocation5 + $0x248] sm:$0xff] }
  0x35   :  { %977 = vmatpush.bf16.msrb.mxu0 %v1618_v52  ;;  %v1645_v52 = vld [vmem:[#allocation5 + $0x200] sm:$0xff] }
  0x36   :  { %1005 = vmatpush.bf16.msrb.mxu2 %v1634_v53  ;;  %v1661_v53 = vld [vmem:[#allocation5 + $0x280] sm:$0xff] }
  0x37   :  { %1019 = vmatpush.bf16.msrb.mxu3 %v1642_v54  ;;  %v1669_v54 = vld [vmem:[#allocation5 + $0x2c0] sm:$0xff] }
  0x38   :  { %991 = vmatpush.bf16.msrb.mxu1 %v1626_v55  ;;  %v1157_v55 = vld [vmem:[#allocation2 + $0x20] sm:$0xf] }
  0x39   :  { %978 = vmatpush.bf16.msrb.mxu0 %v1617_v56  ;;  %v1578_v56 = vld [vmem:[#allocation2 + $0x50] sm:$0xf0] }
  0x3a   :  { %1006 = vmatpush.bf16.msrb.mxu2 %v1633_v57  ;;  %v1165_v57 = vld [vmem:[#allocation2 + $0x28] sm:$0xf] }
  0x3b   :  { %1020 = vmatpush.bf16.msrb.mxu3 %v1641_v58  ;;  %v1579_v58 = vld [vmem:[#allocation2 + $0x58] sm:$0xf0] }
  0x3c   :  { %992 = vmatpush.bf16.msrb.mxu1 %v1625_v59  ;;  %v1573_v59 = vld [vmem:[#allocation2 + $0x2c] sm:$0xf] }
  0x3d   :  { %979 = vmatpush.bf16.msrb.mxu0 %v1616_v60  ;;  %v1167_v60 = vld [vmem:[#allocation2 + $0x5c] sm:$0xf0] }
  0x3e   :  { %1007 = vmatpush.bf16.msrb.mxu2 %v1632_v61  ;;  %v1678_v61 = vld [vmem:[#allocation5 + $0x308] sm:$0xff] }
  0x3f   :  { %1021 = vmatpush.bf16.msrb.mxu3 %v1640_v62  ;;  %v1653_v62 = vld [vmem:[#allocation5 + $0x240] sm:$0xff] }
  0x40   :  { %993 = vmatpush.bf16.msrb.mxu1 %v1624_v63  ;;  %v1158_v63 = vor.u32 %v1578_v56, %v1157_v55 }
  0x41   :  { %980 = vmatpush.bf16.msrb.mxu0 %v1615_v0  ;;  %v1572_v0 = vld [vmem:[#allocation2 + $0x24] sm:$0xf] }
  0x42   :  { %1008 = vmatpush.bf16.msrb.mxu2 %v1631_v1  ;;  %v1159_v1 = vld [vmem:[#allocation2 + $0x54] sm:$0xf0] }
  0x43   :  { %1022 = vmatpush.bf16.msrb.mxu3 %v1639_v2  ;;  %v1166_v2 = vor.u32 %v1579_v58, %v1165_v57 }
  0x44   :  { %994 = vmatpush.bf16.msrb.mxu1 %v1623_v3  ;;  %v1170_v3 = vor.u32 %v1573_v59, %v1167_v60 }
  0x45   :  { %981 = vmatpush.bf16.msrb.mxu0 %v1614_v4  ;;  %v1162_v4 = vor.u32 %v1572_v0, %v1159_v1 }
  0x46   :  { %1009 = vmatpush.bf16.msrb.mxu2 %v1630_v5  ;;  %v1677_v5 = vld [vmem:[#allocation5 + $0x300] sm:$0xff] }
  0x47   :  { %1023 = vmatpush.bf16.msrb.mxu3 %v1638_v6  ;;  %v1173_v6 = vld [vmem:[#allocation2 + $0x30] sm:$0xf] }
  0x48   :  { %995 = vmatpush.bf16.msrb.mxu1 %v1622_v7  ;;  %v1580_v7 = vld [vmem:[#allocation2 + $0x60] sm:$0xf0] }
  0x49   :  { %982 = vmatpush.bf16.msrb.mxu0 %v1613_v8  ;;  %v1174_v8 = vor.u32 %v1580_v7, %v1173_v6 }
  0x4a   :  { %1010 = vmatpush.bf16.msrb.mxu2 %v1629_v9 }
  0x4b   :  { %1024 = vmatpush.bf16.msrb.mxu3 %v1637_v10 }
  0x4c   :  { %996 = vmatpush.bf16.msrb.mxu1 %v1621_v20  ;;  %983 = vmatmul.bf16.vlgmr.msrb.gmra.mxu0 %v1142_v23 }
  0x4d   :  { %1031 = vmatpush.bf16.msra.mxu0 %v1652_v11  ;;  %1011 = vmatmul.bf16.vlgmr.msrb.gmra.mxu2 %v1150_v24 }
  0x4e   :  { %1059 = vmatpush.bf16.msra.mxu2 %v1668_v12  ;;  %1025 = vmatmul.bf16.vlgmr.msrb.gmra.mxu3 %v1154_v26  ;;  %v1688_v12 = vld [vmem:[%s1810_s2] ss:$0 sm:$0xff]  ;;  %s1773_s2 = smov [#allocation7]  }
  0x4f   :  { %1073 = vmatpush.bf16.msra.mxu3 %v1676_v17  ;;  %997 = vmatmul.bf16.vlgmr.msrb.gmra.mxu1 %v1146_v27  ;;  %s1107_s26 = sshll.u32 %s1773_s2, 4  ;;  %s1108_s26 = int_to_ptr.vmem [resolvable:$true] %s1107_s26 }
  0x50   :  { %1045 = vmatpush.bf16.msra.mxu1 %v1660_v25 }
  0x51   :  { %1032 = vmatpush.bf16.msra.mxu0 %v1651_v28 }
  0x52   :  { %1060 = vmatpush.bf16.msra.mxu2 %v1667_v29 }
  0x53   :  { %1074 = vmatpush.bf16.msra.mxu3 %v1675_v30 }
  0x54   :  { %1046 = vmatpush.bf16.msra.mxu1 %v1659_v31 }
  0x55   :  { %1033 = vmatpush.bf16.msra.mxu0 %v1650_v32 }
  0x56   :  { %1061 = vmatpush.bf16.msra.mxu2 %v1666_v33 }
  0x57   :  { %1075 = vmatpush.bf16.msra.mxu3 %v1674_v34 }
  0x58   :  { %1047 = vmatpush.bf16.msra.mxu1 %v1658_v35 }
  0x59   :  { %1034 = vmatpush.bf16.msra.mxu0 %v1649_v36 }
  0x5a   :  { %1062 = vmatpush.bf16.msra.mxu2 %v1665_v37 }
  0x5b   :  { %1076 = vmatpush.bf16.msra.mxu3 %v1673_v38 }
  0x5c   :  { %1048 = vmatpush.bf16.msra.mxu1 %v1657_v39 }
  0x5d   :  { %1035 = vmatpush.bf16.msra.mxu0 %v1648_v40 }
  0x5e   :  { %1063 = vmatpush.bf16.msra.mxu2 %v1664_v41 }
  0x5f   :  { %1077 = vmatpush.bf16.msra.mxu3 %v1672_v42 }
  0x60   :  { %1049 = vmatpush.bf16.msra.mxu1 %v1656_v43 }
  0x61   :  { %1036 = vmatpush.bf16.msra.mxu0 %v1647_v44 }
  0x62   :  { %1064 = vmatpush.bf16.msra.mxu2 %v1663_v45 }
  0x63   :  { %1078 = vmatpush.bf16.msra.mxu3 %v1671_v46 }
  0x64   :  { %1050 = vmatpush.bf16.msra.mxu1 %v1655_v47 }
  0x65   :  { %1037 = vmatpush.bf16.msra.mxu0 %v1646_v48 }
  0x66   :  { %1065 = vmatpush.bf16.msra.mxu2 %v1662_v49 }
  0x67   :  { %1079 = vmatpush.bf16.msra.mxu3 %v1670_v50 }
  0x68   :  { %1051 = vmatpush.bf16.msra.mxu1 %v1654_v51 }
  0x69   :  { %1038 = vmatpush.bf16.msra.mxu0 %v1645_v52 }
  0x6a   :  { %1066 = vmatpush.bf16.msra.mxu2 %v1661_v53 }
  0x6b   :  { %1080 = vmatpush.bf16.msra.mxu3 %v1669_v54 }
  0x6c   :  { %1052 = vmatpush.bf16.msra.mxu1 %v1653_v62  ;;  %1039 = vmatmul.bf16.vlgmr.msra.gmra.mxu0 %v1158_v63 }
  0x6d   :  { %1093 = vmatpush.bf16.msrb.mxu0 %v1678_v61  ;;  %1067 = vmatmul.bf16.vlgmr.msra.gmra.mxu2 %v1166_v2 }
  0x6e   :  { %1081 = vmatmul.bf16.vlgmr.msra.gmra.mxu3 %v1170_v3 }
  0x6f   :  { %1053 = vmatmul.bf16.vlgmr.msra.gmra.mxu1 %v1162_v4 }
  0x71   :  { %1094 = vmatpush.bf16.msrb.mxu0 %v1677_v5 }
  0x7c   :  { %1567 = vmatmul.msk.bf16.vlgmr.msrb.gmra.mxu0 %vm915_vm0, %v1174_v8 }
  0xa9   :  { %v928_v9 = vpop.f32.mrf.mxu0 }
  0xaa   :  { %v929_v15 = vadd.f32 %v1688_v12, %v928_v9 }
  0xac   :  { %v942_v10 = vpop.f32.mrf.mxu1 }
  0xad   :  { %v943_v17 = vadd.f32 %v942_v10, %v929_v15 }
  0xb0   :  { %v956_v11 = vpop.f32.mrf.mxu2 }
  0xb1   :  { %v930_v13 = vpop.f32.mrf.mxu0  ;;  %v970_v14 = vpop.f32.mrf.mxu3  ;;  %v957_v20 = vadd.f32 %v956_v11, %v943_v17 }
  0xb2   :  { %v931_v23 = vadd.f32 %v1688_v12, %v930_v13 }
  0xb3   :  { %v971_v24 = vadd.f32 %v970_v14, %v957_v20 }
  0xb4   :  { %v944_v16 = vpop.f32.mrf.mxu1 }
  0xb5   :  { %v945_v26 = vadd.f32 %v944_v16, %v931_v23 }
  0xb8   :  { %v958_v18 = vpop.f32.mrf.mxu2 }
  0xb9   :  { %v972_v21 = vpop.f32.mrf.mxu3  ;;  %v959_v30 = vadd.f32 %v958_v18, %v945_v26 }
  0xbb   :  { %v973_v33 = vadd.f32 %v972_v21, %v959_v30 }
  0xc9   :  { %v984_v19 = vpop.f32.mrf.mxu0 }
  0xca   :  { %v985_v27 = vadd.f32 %v984_v19, %v971_v24 }
  0xcc   :  { %v998_v22 = vpop.f32.mrf.mxu1 }
  0xcd   :  { %v999_v31 = vadd.f32 %v998_v22, %v985_v27 }
  0xd0   :  { %v1012_v25 = vpop.f32.mrf.mxu2 }
  0xd1   :  { %v986_v28 = vpop.f32.mrf.mxu0  ;;  %v1026_v29 = vpop.f32.mrf.mxu3  ;;  %v1013_v34 = vadd.f32 %v1012_v25, %v999_v31 }
  0xd2   :  { %v987_v37 = vadd.f32 %v986_v28, %v973_v33 }
  0xd3   :  { %v1027_v38 = vadd.f32 %v1026_v29, %v1013_v34 }
  0xd4   :  { %v1000_v32 = vpop.f32.mrf.mxu1 }
  0xd5   :  { %v1001_v41 = vadd.f32 %v1000_v32, %v987_v37 }
  0xd8   :  { %v1014_v35 = vpop.f32.mrf.mxu2 }
  0xd9   :  { %v1028_v39 = vpop.f32.mrf.mxu3  ;;  %v1015_v43 = vadd.f32 %v1014_v35, %v1001_v41 }
  0xdb   :  { %v1029_v47 = vadd.f32 %v1028_v39, %v1015_v43 }
  0xe9   :  { %v1040_v36 = vpop.f32.mrf.mxu0 }
  0xea   :  { %v1041_v42 = vadd.f32 %v1040_v36, %v1027_v38 }
  0xec   :  { %v1054_v40 = vpop.f32.mrf.mxu1 }
  0xed   :  { %v1055_v46 = vadd.f32 %v1054_v40, %v1041_v42 }
  0xf0   :  { %v1068_v44 = vpop.f32.mrf.mxu2 }
  0xf1   :  { %v1042_v45 = vpop.f32.mrf.mxu0  ;;  %v1069_v48 = vadd.f32 %v1068_v44, %v1055_v46  ;;  %v1082_v49 = vpop.f32.mrf.mxu3 }
  0xf2   :  { %v1043_v50 = vadd.f32 %v1042_v45, %v1029_v47 }
  0xf3   :  { %v1083_v52 = vadd.f32 %v1082_v49, %v1069_v48 }
  0xf4   :  { %v1056_v51 = vpop.f32.mrf.mxu1 }
  0xf5   :  { %v1057_v55 = vadd.f32 %v1056_v51, %v1043_v50 }
  0xf8   :  { %v1070_v53 = vpop.f32.mrf.mxu2 }
  0xf9   :  { %v1096_v54 = vpop.f32.mrf.mxu0  ;;  %v1071_v57 = vadd.f32 %v1070_v53, %v1057_v55  ;;  %v1084_v58 = vpop.f32.mrf.mxu3 }
  0xfa   :  { %v1097_v56 = vadd.f32 %v1096_v54, %v1083_v52 }
  0xfb   :  { %v1085_v59 = vadd.f32 %v1084_v58, %v1071_v57 }
  0xfc   :  { %1101 = vst [vmem:[#allocation7] sm:$0xff] %v1097_v56 }
 0x101   :  { %v1098_v60 = vpop.f32.mrf.mxu0 }
 0x102   :  { %v1099_v61 = vadd.f32 %v1098_v60, %v1085_v59 }
 0x104   :  { %1102 = vst [vmem:[#allocation7 + $0x8] sm:$0xff] %v1099_v61 }
 0x105   :  { %1115 = dma.vmem_to_hbm [thread:$0]  %s1108_s26, 256, %s1110_s29, [#allocation4], %s1774_s30, %s1774_s30, %s1775_s4  }
 0x106   :  { %1765 = dma.done.wait [#allocation4], 256  }
 0x107   :  { %1766 = vsyncadd [#allocation4], 4294967040 }
 0x108   :  { %1120 = vsyncpa [#allocation3], 1 }
 0x109   :  { %1121 = vsyncpa [#allocation6], 1 }
 0x10a   :  { %1122 = vsyncpa [#allocation4], 1 }

</bundles_post_ra>
